<compile_context>
chip_gen: v6e
topology: v6e:2x2x1
jax: 0.10.0
libtpu: 0.0.40
codegen_flags: <defaults>
</compile_context>

<pallas_src>
import functools

import jax
import jax.numpy as jnp
from jax.experimental import pallas as pl
from jax.experimental.pallas import tpu as pltpu


def _pick_chunk(num_classes):
    # Lane-aligned chunk of the class dimension; falls back to the whole row
    # when K is small or not 128-aligned.
    for c in (512, 256, 128):
        if num_classes % c == 0:
            return c
    return num_classes


def _ce_label_smooth_kernel(x_ref, t_ref, out_ref, *, eps, num_classes, batch,
                            tile_rows, chunk):
    # x_ref: (TB, K) logits block (f32 or bf16); t_ref: (TB, 1) int32 labels;
    # out_ref: (8, 1) f32 per-tile partial sum (value lives at sublane 0).
    labels = t_ref[...]                                   # (TB, 1) int32
    tb = tile_rows
    n_chunks = num_classes // chunk
    eps_over_k = eps / float(num_classes)
    one_minus_eps = 1.0 - eps

    def load_chunk(c):
        # Static lane-aligned slice -> zero-cost ref view; per-chunk cast so a
        # bf16 tile never materializes a full (TB, K) f32 copy.
        return x_ref[:, c * chunk:(c + 1) * chunk].astype(jnp.float32)

    # ---- Pass 1: per-row max -------------------------------------------
    m = jnp.max(load_chunk(0), axis=1, keepdims=True)     # (TB, 1)
    for c in range(1, n_chunks):
        m = jnp.maximum(m, jnp.max(load_chunk(c), axis=1, keepdims=True))

    # ---- Pass 2: fused exp-sum + smoothed-target weighted sum ----------
    #   per_row = -sum_k t_k log p_k = LSE(x) - sum_k t_k x_k
    #           = [log sum_k exp(x_k - m)] - [sum_k t_k (x_k - m)]
    s_exp = jnp.zeros((tb, 1), jnp.float32)
    s_w = jnp.zeros((tb, 1), jnp.float32)
    for c in range(n_chunks):
        shifted = load_chunk(c) - m                        # (TB, chunk)
        ids = c * chunk + jax.lax.broadcasted_iota(jnp.int32, (tb, chunk), 1)
        w = eps_over_k + one_minus_eps * (ids == labels).astype(jnp.float32)
        s_exp = s_exp + jnp.sum(jnp.exp(shifted), axis=1, keepdims=True)
        s_w = s_w + jnp.sum(shifted * w, axis=1, keepdims=True)

    per_row = jnp.log(s_exp) - s_w                         # (TB, 1)

    # Mask rows past the true batch (last tile may extend past B).  Use a
    # select -- not a multiply -- so NaN/Inf padding garbage never propagates.
    row = (pl.program_id(0) * tile_rows
           + jax.lax.broadcasted_iota(jnp.int32, (tb, 1), 0))
    per_row = jnp.where(row < batch, per_row, 0.0)

    # One partial sum per tile, written at sublane 0 of an (8, 1) block.
    partial = jnp.sum(per_row)
    sub = jax.lax.broadcasted_iota(jnp.int32, (8, 1), 0)
    out_ref[...] = jnp.where(sub == 0, partial, 0.0)


def _vmem_limit_bytes():
    # Size the scoped-VMEM request off the actual chip; ~5/8 of capacity
    # leaves headroom for compiler-internal scratch (=> ~40 MiB on a 64 MiB/TC
    # v7x, ~80 MiB on 128 MiB v5e/v6e).  Fall back to the tightest (v7x) case.
    try:
        cap = int(pltpu.get_tpu_info().vmem_capacity_bytes)
    except Exception:
        cap = 64 * 1024 * 1024
    return min(96 * 1024 * 1024, max(32 * 1024 * 1024, (cap * 5) // 8))


def _choose_tile_rows(batch, num_classes, itemsize, chunk, vmem_limit):
    sublane = max(8, 32 // itemsize)           # 8 for f32, 16 for bf16
    # Live VMEM ~= 2 x input tile (double buffer) + a few f32 chunk-sized
    # temporaries per row; keep that around 60% of the scoped limit.
    budget = (vmem_limit * 3) // 5
    bytes_per_row = 2 * num_classes * itemsize + 20 * chunk
    rows = int(budget // max(1, bytes_per_row))
    rows = max(sublane, (rows // sublane) * sublane)
    if batch >= 2 * sublane:
        # Keep at least two tiles so both v7x TensorCores get work.
        half = pl.cdiv(pl.cdiv(batch, 2), sublane) * sublane
        rows = min(rows, half)
    if batch >= sublane:
        rows = min(rows, (batch // sublane) * sublane)
    return rows


def cross_entropy_label_smooth(inputs, targets, num_classes, epsilon=0.1):
    """inputs: (B, num_classes) logits (f32 or bf16); targets: (B,) int labels."""
    batch, k = inputs.shape
    assert k == num_classes
    targets_2d = targets.astype(jnp.int32).reshape(batch, 1)

    chunk = _pick_chunk(int(num_classes))
    vmem_limit = _vmem_limit_bytes()
    tile_rows = _choose_tile_rows(int(batch), int(num_classes),
                                  inputs.dtype.itemsize, chunk, vmem_limit)
    num_tiles = pl.cdiv(batch, tile_rows)

    kernel = functools.partial(
        _ce_label_smooth_kernel,
        eps=float(epsilon),
        num_classes=int(num_classes),
        batch=int(batch),
        tile_rows=int(tile_rows),
        chunk=int(chunk),
    )

    partials = pl.pallas_call(
        kernel,
        out_shape=jax.ShapeDtypeStruct((num_tiles * 8, 1), jnp.float32),
        grid=(num_tiles,),
        in_specs=[
            pl.BlockSpec((tile_rows, k), lambda i: (i, 0)),   # logits tile
            pl.BlockSpec((tile_rows, 1), lambda i: (i, 0)),   # labels tile
        ],
        out_specs=pl.BlockSpec((8, 1), lambda i: (i, 0)),     # per-tile partial
        compiler_params=pltpu.CompilerParams(
            dimension_semantics=("parallel",),   # independent tiles -> 2 TCs on v7x
            vmem_limit_bytes=int(vmem_limit),
        ),
    )(inputs, targets_2d)

    # loss = (-t * log_probs).mean(0).sum() == sum_b per_row_b / B
    return jnp.sum(partials) / jnp.float32(batch)


def _reference(x, t, num_classes, epsilon):
    log_probs = jax.nn.log_softmax(x.astype(jnp.float32), axis=1)
    onehot = jax.nn.one_hot(t, num_classes, dtype=jnp.float32)
    smooth = (1.0 - epsilon) * onehot + epsilon / num_classes
    return jnp.sum(jnp.mean(-smooth * log_probs, axis=0))


if __name__ == "__main__":
    key = jax.random.PRNGKey(0)
    epsilon = 0.1

    # Case 1: small classifier head, single full tile.
    num_classes = 16
    batch = 8
    kx, kt, key = jax.random.split(key, 3)
    x = jax.random.normal(kx, (batch, num_classes), dtype=jnp.float32)
    t = jax.random.randint(kt, (batch,), 0, num_classes, dtype=jnp.int32)
    loss = cross_entropy_label_smooth(x, t, num_classes, epsilon)
    jax.block_until_ready(loss)
    ref = _reference(x, t, num_classes, epsilon)
    assert jnp.allclose(loss, ref, rtol=1e-5, atol=1e-5), (loss, ref)

    # Case 2: batch not a multiple of the tile (multi-tile + row masking).
    batch2 = 12
    kx2, kt2, key = jax.random.split(key, 3)
    x2 = jax.random.normal(kx2, (batch2, num_classes), dtype=jnp.float32)
    t2 = jax.random.randint(kt2, (batch2,), 0, num_classes, dtype=jnp.int32)
    loss2 = cross_entropy_label_smooth(x2, t2, num_classes, epsilon)
    jax.block_until_ready(loss2)
    ref2 = _reference(x2, t2, num_classes, epsilon)
    assert jnp.allclose(loss2, ref2, rtol=1e-5, atol=1e-5), (loss2, ref2)

    # Case 3: bf16 logits, 128-aligned K (fused multi-chunk path), 2 tiles.
    num_classes3 = 384
    batch3 = 48
    kx3, kt3 = jax.random.split(key)
    x3 = jax.random.normal(kx3, (batch3, num_classes3),
                           dtype=jnp.float32).astype(jnp.bfloat16)
    t3 = jax.random.randint(kt3, (batch3,), 0, num_classes3, dtype=jnp.int32)
    loss3 = cross_entropy_label_smooth(x3, t3, num_classes3, epsilon)
    jax.block_until_ready(loss3)
    ref3 = _reference(x3, t3, num_classes3, epsilon)
    assert jnp.allclose(loss3, ref3, rtol=1e-4, atol=1e-4), (loss3, ref3)

    print("KERNEL_OK")
</pallas_src>

<mosaic_0001>
module attributes {stable_mosaic.version = 11 : i64} {
  func.func @_ce_label_smooth_kernel(%arg0: i32, %arg1: memref<8x16xf32, #tpu.memory_space<vmem>>, %arg2: memref<8x1xi32, #tpu.memory_space<vmem>>, %arg3: memref<8x1xf32, #tpu.memory_space<vmem>>) attributes {dimension_semantics = [#tpu.dimension_semantics<parallel>], iteration_bounds = array<i64: 1>, scalar_prefetch = 0 : i64, scratch_operands = 0 : i64, tpu.core_type = #tpu.core_type<tc>, window_params = [{transform_indices = @transform_0, window_bounds = array<i64: 8, 16>}, {transform_indices = @transform_1, window_bounds = array<i64: 8, 1>}, {transform_indices = @transform_2, window_bounds = array<i64: 8, 1>}]} {
    %c0 = arith.constant 0 : index
    %c0_0 = arith.constant 0 : index
    %0 = vector.load %arg2[%c0, %c0_0] : memref<8x1xi32, #tpu.memory_space<vmem>>, vector<8x1xi32>
    %c0_1 = arith.constant 0 : index
    %c0_2 = arith.constant 0 : index
    %1 = vector.load %arg1[%c0_1, %c0_2] : memref<8x16xf32, #tpu.memory_space<vmem>>, vector<8x16xf32>
    %cst = arith.constant dense<0xFF800000> : vector<8xf32>
    %2 = vector.multi_reduction <maximumf>, %1, %cst [1] : vector<8x16xf32> to vector<8xf32>
    %3 = vector.shape_cast %2 : vector<8xf32> to vector<8x1xf32>
    %cst_3 = arith.constant 0.000000e+00 : f32
    %4 = vector.broadcast %cst_3 : f32 to vector<8x1xf32>
    %cst_4 = arith.constant 0.000000e+00 : f32
    %5 = vector.broadcast %cst_4 : f32 to vector<8x1xf32>
    %c0_5 = arith.constant 0 : index
    %c0_6 = arith.constant 0 : index
    %6 = vector.load %arg1[%c0_5, %c0_6] : memref<8x16xf32, #tpu.memory_space<vmem>>, vector<8x16xf32>
    %7 = vector.broadcast %3 : vector<8x1xf32> to vector<8x16xf32>
    %8 = arith.subf %6, %7 : vector<8x16xf32>
    %9 = tpu.iota {dimensions = array<i32: 1>} : vector<8x16xi32>
    %c0_i32 = arith.constant 0 : i32
    %10 = vector.broadcast %c0_i32 : i32 to vector<8x16xi32>
    %11 = arith.addi %10, %9 : vector<8x16xi32>
    %12 = vector.broadcast %0 : vector<8x1xi32> to vector<8x16xi32>
    %13 = arith.cmpi eq, %11, %12 : vector<8x16xi32>
    %14 = arith.extui %13 : vector<8x16xi1> to vector<8x16xi32>
    %15 = arith.sitofp %14 : vector<8x16xi32> to vector<8x16xf32>
    %cst_7 = arith.constant 0.899999976 : f32
    %16 = vector.broadcast %cst_7 : f32 to vector<8x16xf32>
    %17 = arith.mulf %16, %15 : vector<8x16xf32>
    %cst_8 = arith.constant 6.250000e-03 : f32
    %18 = vector.broadcast %cst_8 : f32 to vector<8x16xf32>
    %19 = arith.addf %18, %17 : vector<8x16xf32>
    %20 = math.exp %8 : vector<8x16xf32>
    %cst_9 = arith.constant dense<0.000000e+00> : vector<8xf32>
    %21 = vector.multi_reduction <add>, %20, %cst_9 [1] : vector<8x16xf32> to vector<8xf32>
    %22 = vector.shape_cast %21 : vector<8xf32> to vector<8x1xf32>
    %23 = arith.addf %4, %22 : vector<8x1xf32>
    %24 = arith.mulf %8, %19 : vector<8x16xf32>
    %cst_10 = arith.constant dense<0.000000e+00> : vector<8xf32>
    %25 = vector.multi_reduction <add>, %24, %cst_10 [1] : vector<8x16xf32> to vector<8xf32>
    %26 = vector.shape_cast %25 : vector<8xf32> to vector<8x1xf32>
    %27 = arith.addf %5, %26 : vector<8x1xf32>
    %28 = math.log %23 : vector<8x1xf32>
    %29 = arith.subf %28, %27 : vector<8x1xf32>
    %c8_i32 = arith.constant 8 : i32
    %30 = arith.muli %arg0, %c8_i32 : i32
    %31 = tpu.iota {dimensions = array<i32: 0>} : vector<8x1xi32>
    %32 = vector.broadcast %30 : i32 to vector<8x1xi32>
    %33 = arith.addi %32, %31 : vector<8x1xi32>
    %c8_i32_11 = arith.constant 8 : i32
    %34 = vector.broadcast %c8_i32_11 : i32 to vector<8x1xi32>
    %35 = arith.cmpi slt, %33, %34 : vector<8x1xi32>
    %cst_12 = arith.constant 0.000000e+00 : f32
    %36 = vector.broadcast %cst_12 : f32 to vector<8x1xf32>
    %37 = arith.select %35, %29, %36 : vector<8x1xi1>, vector<8x1xf32>
    %38 = vector.shape_cast %37 : vector<8x1xf32> to vector<1x8x1xf32>
    %cst_13 = arith.constant dense<0.000000e+00> : vector<1xf32>
    %39 = vector.multi_reduction <add>, %38, %cst_13 [1, 2] : vector<1x8x1xf32> to vector<1xf32>
    %40 = vector.shape_cast %39 : vector<1xf32> to vector<1x1x1xf32>
    %41 = vector.extract %40[0, 0, 0] : f32 from vector<1x1x1xf32>
    %42 = tpu.iota {dimensions = array<i32: 0>} : vector<8x1xi32>
    %c0_i32_14 = arith.constant 0 : i32
    %43 = vector.broadcast %c0_i32_14 : i32 to vector<8x1xi32>
    %44 = arith.cmpi eq, %42, %43 : vector<8x1xi32>
    %cst_15 = arith.constant 0.000000e+00 : f32
    %45 = vector.broadcast %41 : f32 to vector<8x1xf32>
    %46 = vector.broadcast %cst_15 : f32 to vector<8x1xf32>
    %47 = arith.select %44, %45, %46 : vector<8x1xi1>, vector<8x1xf32>
    %c0_16 = arith.constant 0 : index
    %c0_17 = arith.constant 0 : index
    %48 = vector.load %arg3[%c0_16, %c0_17] : memref<8x1xf32, #tpu.memory_space<vmem>>, vector<8x1xf32>
    tpu.vector_store %arg3[%c0_16, %c0_17], %47 {strides = array<i32>} : memref<8x1xf32, #tpu.memory_space<vmem>>, vector<8x1xf32>,
    return
  }
  func.func @transform_0(%arg0: i32) -> (i32, i32) {
    %c0_i32 = arith.constant 0 : i32
    %c0_i32_0 = arith.constant 0 : i32
    return %arg0, %c0_i32 : i32, i32
  }
  func.func @transform_1(%arg0: i32) -> (i32, i32) {
    %c0_i32 = arith.constant 0 : i32
    %c0_i32_0 = arith.constant 0 : i32
    return %arg0, %c0_i32 : i32, i32
  }
  func.func @transform_2(%arg0: i32) -> (i32, i32) {
    %c0_i32 = arith.constant 0 : i32
    %c0_i32_0 = arith.constant 0 : i32
    return %arg0, %c0_i32 : i32, i32
  }
}

</mosaic_0001>

<bundles_post_ra>
// kernel: tpu_custom_call.1
= control target key start
LH: loop header
LB: loop body
LE: loop exit
PB: predicated region body
PF: predicated region fallthrough
CT: control target
= control target key end

     0   :  { %vm13_vm0 = vcmask 130048   ;;  %v78_v1 = vmov 0   ;;  %v18_v6 = vlaneseq  ;;  %v79_v10 = vmov 0.0   ;;  %s109_s0 = inlined_call_operand.vmem [shape: f32[8,16], index: 0, kind: input, shape index: {}]   ;;  %s110_s1 = inlined_call_operand.vmem [shape: s32[8,1], index: 1, kind: input, shape index: {}]   ;;  %s111_s2 = inlined_call_operand.vmem [shape: f32[8,1], index: 2, kind: output, shape index: {}]  }
   0x1   :  { %v12_v0 = vld [vmem:[%s109_s0] sm:$0xff]  ;;  %73 = vset.pattern.permute.xlu0 %v78_v1  ;;  %vm49_vm2 = vcmask 7168  }
   0x2   :  { %v14_v2 = vsel %vm13_vm0, %v12_v0, -inf  ;;  %v11_v3 = vld [vmem:[%s110_s1] sm:$0xff]  ;;  %v19_v8 = vand.u32 127, %v18_v6  ;;  %v44_v31 = vshrl.u32 %v18_v6, 7 }
   0x3   :  { %15 = vmax.xlane.f32.xlu0 %v14_v2 }
   0x4   :  { %vm60_vm3 = vcmp.eq.s32.totalorder %v44_v31, 0 }
  0x19   :  { %21 = vperm.xlu0 %73, %v11_v3  }
  0x8c   :  { %v16_v4 = vpop.xlane.xlu0 %15 }
  0x8d   :  { %v17_v5 = vsub.f32 %v12_v0, %v16_v4 }
  0x8f   :  { %v28_v7 = vmul.f32 1.442695, %v17_v5 }
  0x91   :  { %74 = vpow2.f32 %v28_v7 }
  0x94   :  { %v22_v9 = vpop.permute.xlu0 %21 }
  0x95   :  { %vm23_vm1 = vcmp.eq.s32.totalorder %v19_v8, %v22_v9 }
  0x96   :  { %v68_v11 = vsel %vm23_vm1, 1.0, %v79_v10 }
  0x97   :  { %v26_v12 = vmul.f32 0.9, %v68_v11 }
  0x99   :  { %v27_v13 = vadd.f32 0.00625, %v26_v12 }
  0x9b   :  { %v34_v16 = vmul.f32 %v27_v13, %v17_v5 }
  0x9d   :  { %v35_v17 = vsel %vm13_vm0, %v34_v16, 0.0 }
  0x9e   :  { %v75_v14 = vpop.eup %74 }
  0x9f   :  { %v30_v15 = vsel %vm13_vm0, %v75_v14, 0.0 }
  0xa0   :  { %31 = vadd.xlane.f32.xlu1 %v30_v15 }
  0xa4   :  { %36 = vadd.xlane.f32.xlu1 %v35_v17 }
 0x129   :  { %v32_v18 = vpop.xlane.xlu1 %31 }
 0x12a   :  { %76 = vlog2.f32 %v32_v18 }
 0x12d   :  { %v37_v21 = vpop.xlane.xlu1 %36 }
 0x137   :  { %v77_v19 = vpop.eup %76 }
 0x138   :  { %v40_v20 = vmul.f32 0.6931472, %v77_v19 }
 0x13a   :  { %v41_v22 = vsub.f32 %v40_v20, %v37_v21 }
 0x13c   :  { %v50_v23 = vsel %vm49_vm2, %v41_v22, 0.0 }
 0x13d   :  { %51 = vadd.xlane.f32.xlu1 %v50_v23 }
 0x1c6   :  { %v52_v24 = vpop.xlane.xlu1 %51 }
 0x1c7   :  { %v53_v25 = vrot.slane %v52_v24, 4 }
 0x1c9   :  { %v54_v26 = vadd.f32 %v53_v25, %v52_v24 }
 0x1cb   :  { %v55_v27 = vrot.slane %v54_v26, 2 }
 0x1cd   :  { %v56_v28 = vadd.f32 %v55_v27, %v54_v26 }
 0x1cf   :  { %v57_v29 = vrot.slane %v56_v28, 1 }
 0x1d1   :  { %v58_v30 = vadd.f32 %v57_v29, %v56_v28 }
 0x1d3   :  { %69 = vpush %v58_v30 }
 0x204   :  { %s70_s0 = spop %69 }
 0x205   :  { %v61_v32 = vstv %s70_s0 }
 0x206   :  { %v62_v33 = vsel %vm60_vm3, %v61_v32, 0.0 }
 0x207   :  { %63 = vst.msk [vmem:[%s111_s2] sm:$0xff] %vm49_vm2, %v62_v33 }

</bundles_post_ra>
